<compile_context>
chip_gen: v7x
topology: tpu7x:2x2x1
jax: 0.10.0
libtpu: 0.0.40
codegen_flags: <defaults>
</compile_context>

<pallas_src>
import jax
import jax.numpy as jnp
from jax import lax
from jax.experimental import pallas as pl
from jax.experimental.pallas import tpu as pltpu

NEG_POS_RATIO = 3        # parity with the torch module __init__ (unused in forward)
POS_WEIGHT = 1.0
NEG_WEIGHT = 100.0

MAX_TILE_N = 16384       # anchors per grid step (lane axis); ~2.2 MiB VMEM at C=8
LOG_CLAMP = 100.0        # torch.nn.BCELoss clamps log terms at -100


def _round_up(x, m):
    return (x + m - 1) // m * m


def _yolo_loss_kernel(conf_ref, loc_ref, lab_ref, out_ref):
    """Accumulates six lane-reduced partial sums into a resident (8, 128) block.

    out[:, 0] rows: 0 = smooth-L1 sum        1 = positive-anchor count
                    2 = class-BCE sum (pos)  3 = objectness BCE sum (pos, target=1)
                    4 = negative-anchor cnt  5 = objectness BCE sum (neg, target=0)
                    6,7 = unused
    """
    @pl.when(pl.program_id(0) == 0)
    def _():
        out_ref[...] = jnp.zeros_like(out_ref)

    labels = lab_ref[...]                                   # (1, T) int32
    pos = (labels > 0).astype(jnp.float32)                  # matched anchors
    neg = (labels == 0).astype(jnp.float32)                 # background (pad=-1 excluded)

    # ---- confidence head: BCE in logits form (one softplus per logit) ------
    #   -log(sigmoid(x))     = softplus(-x) = softplus(x) - x   (target = 1)
    #   -log(1 - sigmoid(x)) = softplus(x)                      (target = 0)
    x = conf_ref[...].astype(jnp.float32)                   # (C, T) logits
    sp_raw = jnp.maximum(x, 0.0) + jnp.log1p(jnp.exp(-jnp.abs(x)))   # softplus(x)
    sp_tgt0 = jnp.minimum(sp_raw, LOG_CLAMP)                # BCE vs target 0
    sp_tgt1 = jnp.minimum(sp_raw - x, LOG_CLAMP)            # BCE vs target 1

    # per-anchor class BCE over rows 1..C-1 (positives only):
    #   select the target-1 term on the label row, target-0 elsewhere, row-sum,
    #   then subtract the row-0 (objectness) contribution — for positives the
    #   label is >= 1, so row 0 always contributes sp_tgt0[0].
    row_c = lax.broadcasted_iota(jnp.int32, x.shape, 0)     # class-row index
    sel = jnp.where(row_c == labels, sp_tgt1, sp_tgt0)      # (C, T), one select
    cls_anchor = jnp.sum(sel, axis=0, keepdims=True) - sp_tgt0[0:1, :]   # (1, T)

    # binary objectness head (row 0)
    bin_pos = sp_tgt1[0:1, :]                               # target = 1 (positives)
    bin_neg = sp_tgt0[0:1, :]                               # target = 0 (negatives)

    # ---- smooth-L1 on box regression, positives only -----------------------
    loc = loc_ref[...].astype(jnp.float32)                  # (8, T): rows 0..3 pred, 4..7 gt
    d = loc[0:4, :] - loc[4:8, :]
    ad = jnp.abs(d)
    sl1 = jnp.where(ad < 1.0, 0.5 * d * d, ad - 0.5)
    sl1_anchor = jnp.sum(sl1, axis=0, keepdims=True)        # (1, T)

    # ---- lane-reduce (XLU) each partial to a scalar and accumulate ---------
    def lane_sum(v):                                        # (1, T) -> (1, 1)
        return jnp.sum(v, axis=1, keepdims=True)

    out_ref[0:1, 0:1] += lane_sum(sl1_anchor * pos)
    out_ref[1:2, 0:1] += lane_sum(pos)
    out_ref[2:3, 0:1] += lane_sum(cls_anchor * pos)
    out_ref[3:4, 0:1] += lane_sum(bin_pos * pos)
    out_ref[4:5, 0:1] += lane_sum(neg)
    out_ref[5:6, 0:1] += lane_sum(bin_neg * neg)


def yolo_loss(confidence, predicted_locations, gt_locations, labels,
              pos_weight=POS_WEIGHT, neg_weight=NEG_WEIGHT):
    """Pallas implementation of YOLOLoss.forward.

    confidence:          (B, A, C)  raw logits (column 0 = objectness)
    predicted_locations: (B, A, 4)
    gt_locations:        (B, A, 4)  matched GT boxes per anchor
    labels:              (B, A)     matched labels per anchor (0 = background)
    Returns (smooth_l1_loss, classification_loss + binary_loss).
    """
    # TODO(synk): the torch module derives labels/gt_locations from raw GT via
    # box_utils.match_anchors inside torch.no_grad(); that matching is external
    # bookkeeping and is taken here as precomputed inputs.
    B, A, C = confidence.shape
    N = B * A

    # --- tiling: big lane tiles amortize the ~0.35us per-grid-step overhead.
    if N <= MAX_TILE_N:
        tile_n = _round_up(N, 128)
        n_pad = tile_n
    else:
        tile_n = MAX_TILE_N
        n_pad = _round_up(N, tile_n)
    n_tiles = n_pad // tile_n

    # keep native dtype (bf16-friendly) through the relayout; cast in-kernel.
    conf2 = confidence.reshape(N, C)
    loc2 = jnp.concatenate([predicted_locations.reshape(N, 4),
                            gt_locations.reshape(N, 4)], axis=1)       # (N, 8)
    lab2 = labels.reshape(N).astype(jnp.int32)
    if n_pad != N:
        pad = n_pad - N
        conf2 = jnp.pad(conf2, ((0, pad), (0, 0)))
        loc2 = jnp.pad(loc2, ((0, pad), (0, 0)))
        lab2 = jnp.pad(lab2, (0, pad), constant_values=-1)             # sentinel: excluded

    # One fused relayout pass: anchors onto the lane axis, lane-dense blocks.
    conf_t = conf2.T                      # (C, n_pad)
    loc_t = loc2.T                        # (8, n_pad)  rows 0..3 pred, 4..7 gt
    lab_t = lab2.reshape(1, n_pad)        # (1, n_pad)

    conf_bytes = int(n_pad * C * jnp.dtype(conf_t.dtype).itemsize)
    loc_bytes = int(n_pad * 8 * jnp.dtype(loc_t.dtype).itemsize)
    cost = pl.CostEstimate(
        flops=int(n_pad * (8 * C + 50)),
        transcendentals=int(2 * C * n_pad),
        bytes_accessed=conf_bytes + loc_bytes + 4 * n_pad + 8 * 128 * 4,
    )

    out = pl.pallas_call(
        _yolo_loss_kernel,
        out_shape=jax.ShapeDtypeStruct((8, 128), jnp.float32),
        grid_spec=pltpu.PrefetchScalarGridSpec(
            num_scalar_prefetch=0,
            grid=(n_tiles,),
            in_specs=[
                pl.BlockSpec((C, tile_n), lambda i: (0, i)),
                pl.BlockSpec((8, tile_n), lambda i: (0, i)),
                pl.BlockSpec((1, tile_n), lambda i: (0, i)),
            ],
            out_specs=pl.BlockSpec((8, 128), lambda i: (0, 0)),
        ),
        compiler_params=pltpu.CompilerParams(
            dimension_semantics=("arbitrary",)),
        cost_estimate=cost,
    )(conf_t, loc_t, lab_t)

    sl1_sum = out[0, 0]
    num_pos = out[1, 0]
    cls_sum = out[2, 0]
    bin_pos_sum = out[3, 0]
    num_neg = out[4, 0]
    bin_neg_sum = out[5, 0]

    num_classes = C - 1
    # NOTE: like the torch module, no zero-guard on num_pos / num_neg (NaN if a
    # batch has no positive or no negative anchors) to keep forward parity.
    smooth_l1_loss = sl1_sum / num_pos
    classification_loss = cls_sum / (num_pos * num_classes)
    binary_loss = (bin_pos_sum / num_pos) * pos_weight + \
                  (bin_neg_sum / num_neg) * neg_weight
    return smooth_l1_loss, classification_loss + binary_loss


def yolo_loss_ref(confidence, predicted_locations, gt_locations, labels):
    """Pure-JAX reference with torch semantics (sigmoid + BCELoss log clamp)."""
    C = confidence.shape[-1]
    pos = (labels > 0).astype(jnp.float32)
    neg = (labels < 1).astype(jnp.float32)
    num_pos = jnp.sum(pos)
    num_neg = jnp.sum(neg)

    d = predicted_locations - gt_locations
    ad = jnp.abs(d)
    sl1 = jnp.where(ad < 1.0, 0.5 * d * d, ad - 0.5).sum(-1)
    smooth_l1 = jnp.sum(sl1 * pos) / num_pos

    p = jax.nn.sigmoid(confidence)
    log_p = jnp.maximum(jnp.log(p), -100.0)
    log_1mp = jnp.maximum(jnp.log(1.0 - p), -100.0)

    onehot = jax.nn.one_hot(labels - 1, C - 1, dtype=jnp.float32)
    bce = -(onehot * log_p[..., 1:] + (1.0 - onehot) * log_1mp[..., 1:])
    cls_loss = jnp.sum(bce.sum(-1) * pos) / (num_pos * (C - 1))

    bin_pos = jnp.sum(-log_p[..., 0] * pos) / num_pos
    bin_neg = jnp.sum(-log_1mp[..., 0] * neg) / num_neg
    return smooth_l1, cls_loss + bin_pos * POS_WEIGHT + bin_neg * NEG_WEIGHT


if __name__ == "__main__":
    B, A, C = 2, 256, 8          # batch, anchors, (1 objectness + 7 classes)
    key = jax.random.PRNGKey(0)
    k1, k2, k3, k4 = jax.random.split(key, 4)

    confidence = jax.random.normal(k1, (B, A, C), dtype=jnp.float32)
    predicted_locations = jax.random.normal(k2, (B, A, 4), dtype=jnp.float32)
    gt_locations = jax.random.normal(k3, (B, A, 4), dtype=jnp.float32)
    labels = jax.random.randint(k4, (B, A), 0, C, dtype=jnp.int32)
    # guarantee at least one positive and one negative anchor
    labels = labels.at[0, 0].set(0).at[0, 1].set(3)

    sl1, cls_plus_bin = yolo_loss(confidence, predicted_locations,
                                  gt_locations, labels)
    sl1 = jax.block_until_ready(sl1)
    cls_plus_bin = jax.block_until_ready(cls_plus_bin)

    sl1_ref, cls_ref = yolo_loss_ref(confidence, predicted_locations,
                                     gt_locations, labels)
    assert jnp.allclose(sl1, sl1_ref, rtol=2e-3, atol=2e-3), (sl1, sl1_ref)
    assert jnp.allclose(cls_plus_bin, cls_ref, rtol=2e-3, atol=2e-3), \
        (cls_plus_bin, cls_ref)

    print("KERNEL_OK")
</pallas_src>

<mosaic_0001>
module attributes {stable_mosaic.version = 11 : i64} {
  func.func @_yolo_loss_kernel(%arg0: i32, %arg1: memref<8x512xf32, #tpu.memory_space<vmem>>, %arg2: memref<8x512xf32, #tpu.memory_space<vmem>>, %arg3: memref<1x512xi32, #tpu.memory_space<vmem>>, %arg4: memref<8x128xf32, #tpu.memory_space<vmem>>) attributes {dimension_semantics = [#tpu.dimension_semantics<arbitrary>], iteration_bounds = array<i64: 1>, scalar_prefetch = 0 : i64, scratch_operands = 0 : i64, tpu.core_type = #tpu.core_type<tc>, window_params = [{transform_indices = @transform_0, window_bounds = array<i64: 8, 512>}, {transform_indices = @transform_1, window_bounds = array<i64: 8, 512>}, {transform_indices = @transform_2, window_bounds = array<i64: 1, 512>}, {pipeline_mode = #tpu.pipeline_mode<synchronous>, transform_indices = @transform_3, window_bounds = array<i64: 8, 128>}]} {
    %c0_i32 = arith.constant 0 : i32
    %0 = arith.cmpi eq, %arg0, %c0_i32 : i32
    %1 = arith.extui %0 : i1 to i32
    %c0_i32_0 = arith.constant 0 : i32
    %2 = arith.cmpi ne, %1, %c0_i32_0 : i32
    scf.if %2 {
      %cst_41 = arith.constant 0.000000e+00 : f32
      %85 = vector.broadcast %cst_41 : f32 to vector<8x128xf32>
      %c0_42 = arith.constant 0 : index
      %c0_43 = arith.constant 0 : index
      %86 = vector.load %arg4[%c0_42, %c0_43] : memref<8x128xf32, #tpu.memory_space<vmem>>, vector<8x128xf32>
      tpu.vector_store %arg4[%c0_42, %c0_43], %85 {strides = array<i32>} : memref<8x128xf32, #tpu.memory_space<vmem>>, vector<8x128xf32>,
    } else {
    }
    %c0 = arith.constant 0 : index
    %c0_1 = arith.constant 0 : index
    %3 = vector.load %arg3[%c0, %c0_1] : memref<1x512xi32, #tpu.memory_space<vmem>>, vector<1x512xi32>
    %c0_i32_2 = arith.constant 0 : i32
    %4 = vector.broadcast %c0_i32_2 : i32 to vector<1x512xi32>
    %5 = arith.cmpi sgt, %3, %4 : vector<1x512xi32>
    %6 = arith.extui %5 : vector<1x512xi1> to vector<1x512xi32>
    %7 = arith.sitofp %6 : vector<1x512xi32> to vector<1x512xf32>
    %c0_i32_3 = arith.constant 0 : i32
    %8 = vector.broadcast %c0_i32_3 : i32 to vector<1x512xi32>
    %9 = arith.cmpi eq, %3, %8 : vector<1x512xi32>
    %10 = arith.extui %9 : vector<1x512xi1> to vector<1x512xi32>
    %11 = arith.sitofp %10 : vector<1x512xi32> to vector<1x512xf32>
    %c0_4 = arith.constant 0 : index
    %c0_5 = arith.constant 0 : index
    %12 = vector.load %arg1[%c0_4, %c0_5] : memref<8x512xf32, #tpu.memory_space<vmem>>, vector<8x512xf32>
    %cst = arith.constant 0.000000e+00 : f32
    %13 = vector.broadcast %cst : f32 to vector<8x512xf32>
    %14 = arith.maximumf %12, %13 : vector<8x512xf32>
    %15 = math.absf %12 : vector<8x512xf32>
    %cst_6 = arith.constant 0.000000e+00 : f32
    %16 = vector.broadcast %cst_6 : f32 to vector<8x512xf32>
    %17 = arith.subf %16, %15 : vector<8x512xf32>
    %18 = math.exp %17 : vector<8x512xf32>
    %19 = math.log1p %18 : vector<8x512xf32>
    %20 = arith.addf %14, %19 : vector<8x512xf32>
    %cst_7 = arith.constant 1.000000e+02 : f32
    %21 = vector.broadcast %cst_7 : f32 to vector<8x512xf32>
    %22 = arith.minimumf %20, %21 : vector<8x512xf32>
    %23 = arith.subf %20, %12 : vector<8x512xf32>
    %cst_8 = arith.constant 1.000000e+02 : f32
    %24 = vector.broadcast %cst_8 : f32 to vector<8x512xf32>
    %25 = arith.minimumf %23, %24 : vector<8x512xf32>
    %26 = tpu.iota {dimensions = array<i32: 0>} : vector<8x512xi32>
    %27 = vector.broadcast %3 : vector<1x512xi32> to vector<8x512xi32>
    %28 = arith.cmpi eq, %26, %27 : vector<8x512xi32>
    %29 = arith.select %28, %25, %22 : vector<8x512xi1>, vector<8x512xf32>
    %cst_9 = arith.constant dense<0.000000e+00> : vector<512xf32>
    %30 = vector.multi_reduction <add>, %29, %cst_9 [0] : vector<8x512xf32> to vector<512xf32>
    %31 = vector.shape_cast %30 : vector<512xf32> to vector<1x512xf32>
    %32 = vector.extract_strided_slice %22 {offsets = [0, 0], sizes = [1, 512], strides = [1, 1]} : vector<8x512xf32> to vector<1x512xf32>
    %33 = arith.subf %31, %32 : vector<1x512xf32>
    %34 = vector.extract_strided_slice %25 {offsets = [0, 0], sizes = [1, 512], strides = [1, 1]} : vector<8x512xf32> to vector<1x512xf32>
    %35 = vector.extract_strided_slice %22 {offsets = [0, 0], sizes = [1, 512], strides = [1, 1]} : vector<8x512xf32> to vector<1x512xf32>
    %c0_10 = arith.constant 0 : index
    %c0_11 = arith.constant 0 : index
    %36 = vector.load %arg2[%c0_10, %c0_11] : memref<8x512xf32, #tpu.memory_space<vmem>>, vector<8x512xf32>
    %37 = vector.extract_strided_slice %36 {offsets = [0, 0], sizes = [4, 512], strides = [1, 1]} : vector<8x512xf32> to vector<4x512xf32>
    %38 = vector.extract_strided_slice %36 {offsets = [4, 0], sizes = [4, 512], strides = [1, 1]} : vector<8x512xf32> to vector<4x512xf32>
    %39 = arith.subf %37, %38 : vector<4x512xf32>
    %40 = math.absf %39 : vector<4x512xf32>
    %cst_12 = arith.constant 1.000000e+00 : f32
    %41 = vector.broadcast %cst_12 : f32 to vector<4x512xf32>
    %42 = arith.cmpf olt, %40, %41 : vector<4x512xf32>
    %cst_13 = arith.constant 5.000000e-01 : f32
    %43 = vector.broadcast %cst_13 : f32 to vector<4x512xf32>
    %44 = arith.mulf %43, %39 : vector<4x512xf32>
    %45 = arith.mulf %44, %39 : vector<4x512xf32>
    %cst_14 = arith.constant 5.000000e-01 : f32
    %46 = vector.broadcast %cst_14 : f32 to vector<4x512xf32>
    %47 = arith.subf %40, %46 : vector<4x512xf32>
    %48 = arith.select %42, %45, %47 : vector<4x512xi1>, vector<4x512xf32>
    %cst_15 = arith.constant dense<0.000000e+00> : vector<512xf32>
    %49 = vector.multi_reduction <add>, %48, %cst_15 [0] : vector<4x512xf32> to vector<512xf32>
    %50 = vector.shape_cast %49 : vector<512xf32> to vector<1x512xf32>
    %c0_16 = arith.constant 0 : index
    %c0_17 = arith.constant 0 : index
    %51 = vector.load %arg4[%c0_16, %c0_17] : memref<8x128xf32, #tpu.memory_space<vmem>>, vector<1x1xf32>
    %52 = arith.mulf %50, %7 : vector<1x512xf32>
    %cst_18 = arith.constant dense<0.000000e+00> : vector<1xf32>
    %53 = vector.multi_reduction <add>, %52, %cst_18 [1] : vector<1x512xf32> to vector<1xf32>
    %54 = vector.shape_cast %53 : vector<1xf32> to vector<1x1xf32>
    %55 = arith.addf %51, %54 : vector<1x1xf32>
    %c0_19 = arith.constant 0 : index
    %c0_20 = arith.constant 0 : index
    %56 = vector.load %arg4[%c0_19, %c0_20] : memref<8x128xf32, #tpu.memory_space<vmem>>, vector<1x1xf32>
    tpu.vector_store %arg4[%c0_19, %c0_20], %55 {strides = array<i32>} : memref<8x128xf32, #tpu.memory_space<vmem>>, vector<1x1xf32>,
    %c1 = arith.constant 1 : index
    %c0_21 = arith.constant 0 : index
    %57 = vector.load %arg4[%c1, %c0_21] : memref<8x128xf32, #tpu.memory_space<vmem>>, vector<1x1xf32>
    %cst_22 = arith.constant dense<0.000000e+00> : vector<1xf32>
    %58 = vector.multi_reduction <add>, %7, %cst_22 [1] : vector<1x512xf32> to vector<1xf32>
    %59 = vector.shape_cast %58 : vector<1xf32> to vector<1x1xf32>
    %60 = arith.addf %57, %59 : vector<1x1xf32>
    %c1_23 = arith.constant 1 : index
    %c0_24 = arith.constant 0 : index
    %61 = vector.load %arg4[%c1_23, %c0_24] : memref<8x128xf32, #tpu.memory_space<vmem>>, vector<1x1xf32>
    tpu.vector_store %arg4[%c1_23, %c0_24], %60 {strides = array<i32>} : memref<8x128xf32, #tpu.memory_space<vmem>>, vector<1x1xf32>,
    %c2 = arith.constant 2 : index
    %c0_25 = arith.constant 0 : index
    %62 = vector.load %arg4[%c2, %c0_25] : memref<8x128xf32, #tpu.memory_space<vmem>>, vector<1x1xf32>
    %63 = arith.mulf %33, %7 : vector<1x512xf32>
    %cst_26 = arith.constant dense<0.000000e+00> : vector<1xf32>
    %64 = vector.multi_reduction <add>, %63, %cst_26 [1] : vector<1x512xf32> to vector<1xf32>
    %65 = vector.shape_cast %64 : vector<1xf32> to vector<1x1xf32>
    %66 = arith.addf %62, %65 : vector<1x1xf32>
    %c2_27 = arith.constant 2 : index
    %c0_28 = arith.constant 0 : index
    %67 = vector.load %arg4[%c2_27, %c0_28] : memref<8x128xf32, #tpu.memory_space<vmem>>, vector<1x1xf32>
    tpu.vector_store %arg4[%c2_27, %c0_28], %66 {strides = array<i32>} : memref<8x128xf32, #tpu.memory_space<vmem>>, vector<1x1xf32>,
    %c3 = arith.constant 3 : index
    %c0_29 = arith.constant 0 : index
    %68 = vector.load %arg4[%c3, %c0_29] : memref<8x128xf32, #tpu.memory_space<vmem>>, vector<1x1xf32>
    %69 = arith.mulf %34, %7 : vector<1x512xf32>
    %cst_30 = arith.constant dense<0.000000e+00> : vector<1xf32>
    %70 = vector.multi_reduction <add>, %69, %cst_30 [1] : vector<1x512xf32> to vector<1xf32>
    %71 = vector.shape_cast %70 : vector<1xf32> to vector<1x1xf32>
    %72 = arith.addf %68, %71 : vector<1x1xf32>
    %c3_31 = arith.constant 3 : index
    %c0_32 = arith.constant 0 : index
    %73 = vector.load %arg4[%c3_31, %c0_32] : memref<8x128xf32, #tpu.memory_space<vmem>>, vector<1x1xf32>
    tpu.vector_store %arg4[%c3_31, %c0_32], %72 {strides = array<i32>} : memref<8x128xf32, #tpu.memory_space<vmem>>, vector<1x1xf32>,
    %c4 = arith.constant 4 : index
    %c0_33 = arith.constant 0 : index
    %74 = vector.load %arg4[%c4, %c0_33] : memref<8x128xf32, #tpu.memory_space<vmem>>, vector<1x1xf32>
    %cst_34 = arith.constant dense<0.000000e+00> : vector<1xf32>
    %75 = vector.multi_reduction <add>, %11, %cst_34 [1] : vector<1x512xf32> to vector<1xf32>
    %76 = vector.shape_cast %75 : vector<1xf32> to vector<1x1xf32>
    %77 = arith.addf %74, %76 : vector<1x1xf32>
    %c4_35 = arith.constant 4 : index
    %c0_36 = arith.constant 0 : index
    %78 = vector.load %arg4[%c4_35, %c0_36] : memref<8x128xf32, #tpu.memory_space<vmem>>, vector<1x1xf32>
    tpu.vector_store %arg4[%c4_35, %c0_36], %77 {strides = array<i32>} : memref<8x128xf32, #tpu.memory_space<vmem>>, vector<1x1xf32>,
    %c5 = arith.constant 5 : index
    %c0_37 = arith.constant 0 : index
    %79 = vector.load %arg4[%c5, %c0_37] : memref<8x128xf32, #tpu.memory_space<vmem>>, vector<1x1xf32>
    %80 = arith.mulf %35, %11 : vector<1x512xf32>
    %cst_38 = arith.constant dense<0.000000e+00> : vector<1xf32>
    %81 = vector.multi_reduction <add>, %80, %cst_38 [1] : vector<1x512xf32> to vector<1xf32>
    %82 = vector.shape_cast %81 : vector<1xf32> to vector<1x1xf32>
    %83 = arith.addf %79, %82 : vector<1x1xf32>
    %c5_39 = arith.constant 5 : index
    %c0_40 = arith.constant 0 : index
    %84 = vector.load %arg4[%c5_39, %c0_40] : memref<8x128xf32, #tpu.memory_space<vmem>>, vector<1x1xf32>
    tpu.vector_store %arg4[%c5_39, %c0_40], %83 {strides = array<i32>} : memref<8x128xf32, #tpu.memory_space<vmem>>, vector<1x1xf32>,
    return
  }
  func.func @transform_0(%arg0: i32) -> (i32, i32) {
    %c0_i32 = arith.constant 0 : i32
    %c0_i32_0 = arith.constant 0 : i32
    return %c0_i32, %arg0 : i32, i32
  }
  func.func @transform_1(%arg0: i32) -> (i32, i32) {
    %c0_i32 = arith.constant 0 : i32
    %c0_i32_0 = arith.constant 0 : i32
    return %c0_i32, %arg0 : i32, i32
  }
  func.func @transform_2(%arg0: i32) -> (i32, i32) {
    %c0_i32 = arith.constant 0 : i32
    %c0_i32_0 = arith.constant 0 : i32
    return %c0_i32, %arg0 : i32, i32
  }
  func.func @transform_3(%arg0: i32) -> (i32, i32) {
    %c0_i32 = arith.constant 0 : i32
    %c0_i32_0 = arith.constant 0 : i32
    %c0_i32_1 = arith.constant 0 : i32
    return %c0_i32, %c0_i32_0 : i32, i32
  }
}

</mosaic_0001>

<bundles_post_ra>
// kernel: tpu_custom_call.1
= control target key start
LH: loop header
LB: loop body
LE: loop exit
PB: predicated region body
PF: predicated region fallthrough
CT: control target
= control target key end

     0   :  { %8 = vsyncpa [#allocation3], 0  ;;  %s827_s0 = inlined_call_operand.hbm [shape: f32[8,512], index: 0, kind: input, shape index: {}]   ;;  %s828_s1 = inlined_call_operand.hbm [shape: f32[8,512], index: 1, kind: input, shape index: {}]   ;;  %s829_s2 = inlined_call_operand.vmem [shape: s32[1,512], index: 2, kind: input, shape index: {}]   ;;  %s830_s3 = inlined_call_operand.hbm [shape: f32[8,128], index: 3, kind: output, shape index: {}]  }
   0x1   :  { %9 = vsyncpa [#allocation6], 0 }
   0x2   :  { %10 = vsyncpa [#allocation4], 0  ;;  %s500_s12 = smov [#allocation2]   ;;  %s501_s14 = smov [#allocation5]  }
   0x3   :  { %s17_s13 = sshll.u32 %s500_s12, 4  ;;  %s27_s15 = sshll.u32 %s501_s14, 4  ;;  %s18_s13 = int_to_ptr.vmem [resolvable:$true] %s17_s13  ;;  %s28_s15 = int_to_ptr.vmem [resolvable:$true] %s27_s15 }
   0x4   :  { %s428_s18 = scalar_lea.hbm %s827_s0, 512 }
   0x5   :  { %p429_p0 = scmp.ne.s32.totalorder %s827_s0, %s428_s18  ;;  %p432_p1 = scmp.lt.u32.totalorder %s428_s18, %s827_s0 }
   0x7   :  { %p434_p2 = pnand %p432_p1, %p429_p0 }
   0x9   :  { %437 = shalt.err (!%p434_p2)
}
   0xa   :  { %s438_s23 = scalar_lea.vmem %s18_s13, 512  ;;  %p443_p4 = scmp.lt.s32.totalorder %s18_s13, %s18_s13 }
   0xb   :  { %p439_p3 = scmp.ne.s32.totalorder %s18_s13, %s438_s23  ;;  %p444_p5 = scmp.lt.s32.totalorder %s438_s23, %s438_s23 }
   0xd   :  { %p445_p6 = por %p444_p5, %p443_p4 }
   0xf   :  { %p446_p7 = pnand %p445_p6, %p439_p3 }
  0x11   :  { %449 = shalt.err (!%p446_p7)
}
  0x12   :  { %20 = dma.hbm_to_vmem [thread:$0]  %s827_s0, 512, %s18_s13, [#allocation3]  }
  0x13   :  { %s450_s28 = scalar_lea.hbm %s828_s1, 512 }
  0x14   :  { %p451_p8 = scmp.ne.s32.totalorder %s828_s1, %s450_s28  ;;  %p454_p9 = scmp.lt.u32.totalorder %s450_s28, %s828_s1 }
  0x16   :  { %p456_p10 = pnand %p454_p9, %p451_p8 }
  0x18   :  { %459 = shalt.err (!%p456_p10)
}
  0x19   :  { %s460_s6 = scalar_lea.vmem %s28_s15, 512  ;;  %p465_p12 = scmp.lt.s32.totalorder %s28_s15, %s28_s15 }
  0x1a   :  { %p461_p11 = scmp.ne.s32.totalorder %s28_s15, %s460_s6  ;;  %p466_p13 = scmp.lt.s32.totalorder %s460_s6, %s460_s6 }
  0x1c   :  { %p467_p0 = por %p466_p13, %p465_p12 }
  0x1e   :  { %p468_p1 = pnand %p467_p0, %p461_p11 }
  0x20   :  { %471 = shalt.err (!%p468_p1)
}
  0x21   :  { %30 = dma.hbm_to_vmem [thread:$0]  %s828_s1, 512, %s28_s15, [#allocation6]  }
  0x22   :  { %494 = dma.done.wait [#allocation3], 512  }
  0x23   :  { %495 = vsyncadd [#allocation3], 4294966784 }
  0x24   :  { %496 = dma.done.wait [#allocation6], 512  }
  0x25   :  { %497 = vsyncadd [#allocation6], 4294966784  ;;  %v127_v0 = vlaneseq  ;;  %v502_v1 = vmov 0.0   ;;  %v554_v3 = vld [vmem:[%s829_s2] sm:$0xf]  ;;  %v558_v5 = vld [vmem:[#allocation2 + $0x8] sm:$0xff] }
  0x26   :  { %43 = vst [vmem:[#allocation7] sm:$0xff] %v502_v1  ;;  %v556_v4 = vld [vmem:[#allocation2] sm:$0xff]  ;;  %vm45_vm0 = vcmp.gt.s32.totalorder %v554_v3, 0  ;;  %v561_v6 = vld [vmem:[#allocation2 + $0x10] sm:$0xff]  ;;  %v563_v7 = vld [vmem:[#allocation2 + $0x18] sm:$0xff]  ;;  %vm280_vm1 = vcmask 1040384  }
  0x27   :  { %v549_v2 = vshrl.u32 %v127_v0, 7  ;;  %v402_v9 = vsel %vm45_vm0, 1.0, %v502_v1  ;;  %v59_v10 = vand.u32 2147483647, %v556_v4  ;;  %v60_v13 = vand.u32 2147483647, %v558_v5 }
  0x28   :  { %v61_v14 = vand.u32 2147483647, %v561_v6  ;;  %v62_v15 = vand.u32 2147483647, %v563_v7  ;;  %v55_v16 = vmax.f32 %v556_v4, 0.0  ;;  %v56_v17 = vmax.f32 %v558_v5, 0.0 }
  0x29   :  { %v566_v8 = vsub.s32 0, %v549_v2  ;;  %v571_v11 = vsub.s32 1, %v549_v2  ;;  %v574_v12 = vsub.s32 2, %v549_v2  ;;  %v63_v18 = vsub.f32 0.0, %v59_v10  ;;  %v181_v28 = vld [vmem:[#allocation5] sm:$0xff]  ;;  %v182_v29 = vld [vmem:[#allocation5 + $0x8] sm:$0xff] }
  0x2a   :  { %v582_v19 = vsub.s32 3, %v549_v2  ;;  %v64_v20 = vsub.f32 0.0, %v60_v13  ;;  %v65_v21 = vsub.f32 0.0, %v61_v14  ;;  %v66_v22 = vsub.f32 0.0, %v62_v15  ;;  %v183_v37 = vld [vmem:[#allocation5 + $0x10] sm:$0xff]  ;;  %v184_v38 = vld [vmem:[#allocation5 + $0x18] sm:$0xff] }
  0x2b   :  { %v132_v23 = vrot.slane %v554_v3, %v566_v8  ;;  %v57_v24 = vmax.f32 %v561_v6, 0.0  ;;  %v58_v25 = vmax.f32 %v563_v7, 0.0  ;;  %v67_v26 = vmul.f32 1.442695, %v63_v18  ;;  %s503_s1 = smov [#allocation7]  }
  0x2c   :  { %v589_v27 = vrot.slane %v402_v9, %v566_v8  ;;  %v69_v30 = vmul.f32 1.442695, %v64_v20  ;;  %v71_v31 = vmul.f32 1.442695, %v65_v21  ;;  %v73_v32 = vmul.f32 1.442695, %v66_v22 }
  0x2d   :  { %v592_v33 = vrot.slane %v402_v9, %v571_v11  ;;  %412 = vpow2.f32 %v67_v26  ;;  %v595_v34 = vrot.slane %v402_v9, %v574_v12  ;;  %v598_v35 = vrot.slane %v402_v9, %v582_v19  ;;  %s392_s2 = sshll.u32 %s503_s1, 4  ;;  %s393_s2 = int_to_ptr.vmem [resolvable:$true] %s392_s2 }
  0x2e   :  { %v294_v36 = vsel %vm280_vm1, %v589_v27, 0.0  ;;  %414 = vpow2.f32 %v69_v30  ;;  %v189_v40 = vrot.slane %v181_v28, 4  ;;  %v190_v41 = vrot.slane %v182_v29, 4  ;;  %s472_s10 = scalar_lea.vmem %s393_s2, 128  ;;  %p477_p3 = scmp.lt.s32.totalorder %s393_s2, %s393_s2 }
  0x2f   :  { %v295_v39 = vsel %vm280_vm1, %v592_v33, 0.0  ;;  %416 = vpow2.f32 %v71_v31  ;;  %v297_v43 = vsel %vm280_vm1, %v595_v34, 0.0  ;;  %v299_v44 = vsel %vm280_vm1, %v598_v35, 0.0  ;;  %p473_p2 = scmp.ne.s32.totalorder %s393_s2, %s472_s10  ;;  %p478_p4 = scmp.lt.s32.totalorder %s472_s10, %s472_s10 }
  0x30   :  { %v296_v42 = vadd.f32 %v295_v39, %v294_v36  ;;  %418 = vpow2.f32 %v73_v32  ;;  %v191_v45 = vrot.slane %v183_v37, 4  ;;  %v192_v46 = vrot.slane %v184_v38, 4 }
  0x31   :  { %v197_v47 = vsub.f32 %v181_v28, %v189_v40  ;;  %v136_v48 = vrot.slane %v554_v3, %v571_v11  ;;  %v198_v50 = vsub.f32 %v182_v29, %v190_v41  ;;  %vm48_vm2 = vcmp.eq.s32.totalorder %v554_v3, 0  ;;  %p479_p5 = por %p478_p4, %p477_p3 }
  0x32   :  { %v298_v49 = vadd.f32 %v297_v43, %v296_v42  ;;  %v199_v51 = vsub.f32 %v183_v37, %v191_v45  ;;  %v200_v52 = vsub.f32 %v184_v38, %v192_v46  ;;  %v140_v55 = vrot.slane %v554_v3, %v574_v12 }
  0x33   :  { %v201_v53 = vand.u32 2147483647, %v197_v47  ;;  %v209_v54 = vmul.f32 0.5, %v197_v47  ;;  %v202_v57 = vand.u32 2147483647, %v198_v50  ;;  %v210_v58 = vmul.f32 0.5, %v198_v50  ;;  %p480_p6 = pnand %p479_p5, %p473_p2 }
  0x34   :  { %v300_v56 = vadd.f32 %v299_v44, %v298_v49  ;;  %v144_v59 = vrot.slane %v554_v3, %v582_v19  ;;  %v203_v60 = vand.u32 2147483647, %v199_v51  ;;  %v204_v61 = vand.u32 2147483647, %v200_v52 }
  0x35   :  { %v211_v62 = vmul.f32 0.5, %v199_v51  ;;  %vm225_vm3 = vcmask 1043456   ;;  %vm615_vm4 = vcmp.lt.f32.partialorder %v201_v53, 1.0  ;;  %vm619_vm5 = vcmp.lt.f32.partialorder %v202_v57, 1.0 }
  0x36   :  { %301 = vadd.xlane.f32.xlu0 %v300_v56  ;;  %v212_v9 = vmul.f32 0.5, %v200_v52  ;;  %v626_v10 = vsel %vm48_vm2, 1.0, %v502_v1  ;;  %vm628_vm6 = vcmp.lt.f32.partialorder %v203_v60, 1.0  ;;  %v213_v14 = vmul.f32 %v209_v54, %v197_v47 }
  0x37   :  { %v214_v15 = vmul.f32 %v210_v58, %v198_v50  ;;  %v404_v18 = vadd.f32 -0.5, %v201_v53  ;;  %v413_v20 = vpop.eup %412  ;;  %vm632_vm7 = vcmp.lt.f32.partialorder %v204_v61, 1.0  ;;  %v215_v22 = vmul.f32 %v211_v62, %v199_v51 }
  0x38   :  { %v216_v26 = vmul.f32 %v212_v9, %v200_v52  ;;  %v405_v28 = vadd.f32 -0.5, %v202_v57  ;;  %v415_v29 = vpop.eup %414  ;;  %v75_v30 = vadd.f32 1.0, %v413_v20  ;;  %v78_v31 = vmul.f32 -0.5, %v413_v20 }
  0x39   :  { %v81_v1 = vand.u32 2147483647, %v413_v20  ;;  %v406_v32 = vadd.f32 -0.5, %v203_v60  ;;  %v417_v36 = vpop.eup %416  ;;  %v84_v37 = vadd.f32 1.0, %v415_v29  ;;  %v87_v38 = vmul.f32 -0.5, %v415_v29 }
  0x3a   :  { %v90_v39 = vand.u32 2147483647, %v415_v29  ;;  %v407_v40 = vadd.f32 -0.5, %v204_v61  ;;  %v419_v41 = vpop.eup %418  ;;  %420 = vlog2.f32 %v75_v30  ;;  %v79_v42 = vadd.f32 1.0, %v78_v31 }
  0x3b   :  { %v93_v43 = vadd.f32 1.0, %v417_v36  ;;  %v221_v44 = vsel %vm615_vm4, %v213_v14, %v404_v18  ;;  %422 = vlog2.f32 %v84_v37  ;;  %v88_v45 = vadd.f32 1.0, %v87_v38 }
  0x3c   :  { %v96_v46 = vmul.f32 -0.5, %v417_v36  ;;  %v222_v47 = vsel %vm619_vm5, %v214_v15, %v405_v28  ;;  %vm640_vm8 = vcmp.lt.f32.partialorder %v81_v1, 0.0004427343  ;;  %v99_v50 = vand.u32 2147483647, %v417_v36 }
  0x3d   :  { %424 = vlog2.f32 %v93_v43  ;;  %v102_v51 = vadd.f32 1.0, %v419_v41  ;;  %v80_v52 = vmul.f32 %v413_v20, %v79_v42  ;;  %vm644_vm9 = vcmp.lt.f32.partialorder %v90_v39, 0.0004427343 }
  0x3e   :  { %v97_v54 = vadd.f32 1.0, %v96_v46  ;;  %v105_v56 = vmul.f32 -0.5, %v419_v41  ;;  %v108_v57 = vand.u32 2147483647, %v419_v41  ;;  %v223_v58 = vsel %vm628_vm6, %v215_v22, %v406_v32 }
  0x3f   :  { %426 = vlog2.f32 %v102_v51  ;;  %v224_v60 = vsel %vm632_vm7, %v216_v26, %v407_v40  ;;  %v89_v61 = vmul.f32 %v415_v29, %v88_v45  ;;  %vm652_vm10 = vcmp.lt.f32.partialorder %v99_v50, 0.0004427343 }
  0x40   :  { %v106_v63 = vadd.f32 1.0, %v105_v56  ;;  %v226_v0 = vsel %vm225_vm3, %v221_v44, 0.0  ;;  %v233_v14 = vsel %vm225_vm3, %v222_v47, 0.0  ;;  %v240_v15 = vsel %vm225_vm3, %v223_v58, 0.0 }
  0x41   :  { %v227_v9 = vrot.slane %v226_v0, 4  ;;  %v247_v18 = vsel %vm225_vm3, %v224_v60, 0.0  ;;  %v98_v13 = vmul.f32 %v417_v36, %v97_v54  ;;  %v234_v20 = vrot.slane %v233_v14, 4 }
  0x42   :  { %v241_v22 = vrot.slane %v240_v15, 4  ;;  %v248_v21 = vrot.slane %v247_v18, 4  ;;  %v107_v26 = vmul.f32 %v419_v41, %v106_v63  ;;  %vm660_vm11 = vcmp.lt.f32.partialorder %v108_v57, 0.0004427343 }
  0x43   :  { %v228_v29 = vadd.f32 %v227_v9, %v226_v0  ;;  %v666_v30 = vrot.slane %v626_v10, %v566_v8  ;;  %vm672_vm12 = vcmp.eq.s32.totalorder %v549_v2, %v132_v23  ;;  %v235_v1 = vadd.f32 %v234_v20, %v233_v14 }
  0x44   :  { %v242_v32 = vadd.f32 %v241_v22, %v240_v15  ;;  %v249_v36 = vadd.f32 %v248_v21, %v247_v18  ;;  %v678_v37 = vrot.slane %v626_v10, %v571_v11  ;;  %v421_v38 = vpop.eup %420  ;;  %vm684_vm13 = vcmp.eq.s32.totalorder %v549_v2, %v136_v48 }
  0x45   :  { %v229_v8 = vrot.slane %v228_v29, 2  ;;  %v690_v23 = vrot.slane %v626_v10, %v574_v12  ;;  %v694_v40 = vrot.slane %v626_v10, %v582_v19  ;;  %v698_v41 = vsel %vm280_vm1, %v666_v30, 0.0  ;;  %v423_v42 = vpop.eup %422 }
  0x46   :  { %v77_v11 = vmul.f32 0.6931472, %v421_v38  ;;  %vm704_vm14 = vcmp.eq.s32.totalorder %v549_v2, %v140_v55  ;;  %v236_v43 = vrot.slane %v235_v1, 2  ;;  %v243_v44 = vrot.slane %v242_v32, 2 }
  0x47   :  { %v250_v45 = vrot.slane %v249_v36, 2  ;;  %v425_v46 = vpop.eup %424  ;;  %v86_v10 = vmul.f32 0.6931472, %v423_v42  ;;  %v230_v47 = vadd.f32 %v229_v8, %v228_v29  ;;  %v710_v50 = vsel %vm280_vm1, %v678_v37, 0.0 }
  0x48   :  { %v714_v51 = vsel %vm280_vm1, %v690_v23, 0.0  ;;  %v83_v12 = vsel %vm640_vm8, %v80_v52, %v77_v11  ;;  %v95_v55 = vmul.f32 0.6931472, %v425_v46  ;;  %vm722_vm15 = vcmp.eq.s32.totalorder %v549_v2, %v144_v59 }
  0x49   :  { %v237_v56 = vadd.f32 %v236_v43, %v235_v1  ;;  %v244_v57 = vadd.f32 %v243_v44, %v242_v32  ;;  %v427_v58 = vpop.eup %426  ;;  %v92_v60 = vsel %vm644_vm9, %v89_v61, %v86_v10  ;;  %v111_v63 = vadd.f32 %v83_v12, %v55_v16 }
  0x4a   :  { %v231_v49 = vrot.slane %v230_v47, 1  ;;  %v251_v52 = vadd.f32 %v250_v45, %v249_v36  ;;  %v101_v0 = vsel %vm652_vm10, %v98_v13, %v95_v55  ;;  %v104_v3 = vmul.f32 0.6931472, %v427_v58 }
  0x4b   :  { %v112_v2 = vadd.f32 %v92_v60, %v56_v17  ;;  %v238_v19 = vrot.slane %v237_v56, 1  ;;  %v113_v59 = vadd.f32 %v101_v0, %v57_v24  ;;  %v736_v9 = vmin.f32 %v111_v63, 100.0 }
  0x4c   :  { %v119_v53 = vsub.f32 %v111_v63, %v556_v4  ;;  %v232_v61 = vadd.f32 %v231_v49, %v230_v47  ;;  %v110_v16 = vsel %vm660_vm11, %v107_v26, %v104_v3  ;;  %v245_v22 = vrot.slane %v244_v57, 1 }
  0x4d   :  { %v741_v14 = vmin.f32 %v112_v2, 100.0  ;;  %v120_v62 = vsub.f32 %v112_v2, %v558_v5  ;;  %v239_v15 = vadd.f32 %v238_v19, %v237_v56  ;;  %v114_v17 = vadd.f32 %v110_v16, %v58_v25 }
  0x4e   :  { %v746_v18 = vmin.f32 %v113_v59, 100.0  ;;  %v121_v24 = vsub.f32 %v113_v59, %v561_v6  ;;  %v123_v13 = vmin.f32 %v119_v53, 100.0  ;;  %v252_v4 = vrot.slane %v251_v52, 1 }
  0x4f   :  { %v124_v20 = vmin.f32 %v120_v62, 100.0  ;;  %v276_v21 = vmul.f32 %v589_v27, %v232_v61  ;;  %v750_v28 = vmin.f32 %v114_v17, 100.0  ;;  %v122_v26 = vsub.f32 %v114_v17, %v563_v7 }
  0x50   :  { %v125_v29 = vmin.f32 %v121_v24, 100.0  ;;  %v149_v5 = vsel %vm672_vm12, %v123_v13, %v736_v9  ;;  %v322_v1 = vmul.f32 %v589_v27, %v123_v13  ;;  %v246_v60 = vadd.f32 %v245_v22, %v244_v57 }
  0x51   :  { %v150_v25 = vsel %vm684_vm13, %v124_v20, %v741_v14  ;;  %v153_v6 = vrot.slane %v149_v5, 4  ;;  %v323_v32 = vmul.f32 %v592_v33, %v124_v20  ;;  %v126_v36 = vmin.f32 %v122_v26, 100.0 }
  0x52   :  { %v151_v38 = vsel %vm704_vm14, %v125_v29, %v746_v18  ;;  %v159_v7 = vrot.slane %v150_v25, 4  ;;  %v324_v8 = vmul.f32 %v595_v34, %v125_v29  ;;  %v326_v11 = vsel %vm280_vm1, %v322_v1, 0.0 }
  0x53   :  { %v154_v42 = vadd.f32 %v153_v6, %v149_v5  ;;  %v165_v31 = vrot.slane %v151_v38, 4  ;;  %v327_v39 = vsel %vm280_vm1, %v323_v32, 0.0  ;;  %v152_v43 = vsel %vm722_vm15, %v126_v36, %v750_v28 }
  0x54   :  { %v160_v44 = vadd.f32 %v159_v7, %v150_v25  ;;  %v325_v45 = vmul.f32 %v598_v35, %v126_v36  ;;  %v328_v46 = vadd.f32 %v327_v39, %v326_v11  ;;  %v171_v48 = vrot.slane %v152_v43, 4 }
  0x55   :  { %v166_v10 = vadd.f32 %v165_v31, %v151_v38  ;;  %v329_v47 = vsel %vm280_vm1, %v324_v8, 0.0  ;;  %v155_v12 = vrot.slane %v154_v42, 2  ;;  %v253_v3 = vadd.f32 %v252_v4, %v251_v52 }
  0x56   :  { %v330_v55 = vadd.f32 %v329_v47, %v328_v46  ;;  %v331_v56 = vsel %vm280_vm1, %v325_v45, 0.0  ;;  %v161_v58 = vrot.slane %v160_v44, 2  ;;  %v172_v63 = vadd.f32 %v171_v48, %v152_v43 }
  0x57   :  { %v156_v49 = vadd.f32 %v155_v12, %v154_v42  ;;  %v167_v0 = vrot.slane %v166_v10, 2  ;;  %v277_v19 = vmul.f32 %v592_v33, %v239_v15  ;;  %v278_v59 = vmul.f32 %v595_v34, %v246_v60  ;;  %v254_v60 = vld [vmem:[#allocation7] sm:$0x1] }
  0x58   :  { %v332_v54 = vadd.f32 %v331_v56, %v330_v55  ;;  %v162_v2 = vadd.f32 %v161_v58, %v160_v44  ;;  %v173_v16 = vrot.slane %v172_v63, 2  ;;  %v279_v62 = vmul.f32 %v598_v35, %v253_v3 }
  0x59   :  { %v157_v53 = vrot.slane %v156_v49, 1  ;;  %v168_v61 = vadd.f32 %v167_v0, %v166_v10  ;;  %v281_v24 = vsel %vm280_vm1, %v276_v21, 0.0  ;;  %v282_v57 = vsel %vm280_vm1, %v277_v19, 0.0  ;;  %v337_v0 = vld [vmem:[#allocation7 + $0x4] sm:$0x1] }
  0x5a   :  { %333 = vadd.xlane.f32.xlu1 %v332_v54  ;;  %v163_v17 = vrot.slane %v162_v2, 1  ;;  %v284_v13 = vsel %vm280_vm1, %v278_v59, 0.0  ;;  %v174_v22 = vadd.f32 %v173_v16, %v172_v63  ;;  %v283_v4 = vadd.f32 %v282_v57, %v281_v24  ;;  %v305_v54 = vld [vmem:[#allocation7 + $0x2] sm:$0x1] }
  0x5b   :  { %v158_v52 = vadd.f32 %v157_v53, %v156_v49  ;;  %v169_v20 = vrot.slane %v168_v61, 1  ;;  %v286_v26 = vsel %vm280_vm1, %v279_v62, 0.0  ;;  %v371_v29 = vmul.f32 %v666_v30, %v736_v9  ;;  %v370_v53 = vld [vmem:[#allocation7 + $0x5] sm:$0x1] }
  0x5c   :  { %v164_v15 = vadd.f32 %v163_v17, %v162_v2  ;;  %v372_v5 = vmul.f32 %v678_v37, %v741_v14  ;;  %v175_v6 = vrot.slane %v174_v22, 1  ;;  %v285_v1 = vadd.f32 %v284_v13, %v283_v4 }
  0x5d   :  { %v170_v25 = vadd.f32 %v169_v20, %v168_v61  ;;  %v177_v21 = vsub.f32 %v158_v52, %v736_v9  ;;  %v373_v36 = vmul.f32 %v690_v23, %v746_v18  ;;  %v375_v38 = vsel %vm280_vm1, %v371_v29, 0.0 }
  0x5e   :  { %v178_v32 = vsub.f32 %v164_v15, %v741_v14  ;;  %v361_v7 = vadd.f32 %v710_v50, %v698_v41  ;;  %v176_v8 = vadd.f32 %v175_v6, %v174_v22  ;;  %v287_v42 = vadd.f32 %v286_v26, %v285_v1 }
  0x5f   :  { %v179_v30 = vsub.f32 %v170_v25, %v746_v18  ;;  %v306_v37 = vmul.f32 %v589_v27, %v177_v21  ;;  %v376_v9 = vsel %vm280_vm1, %v372_v5, 0.0  ;;  %v364_v14 = vsel %vm280_vm1, %v694_v40, 0.0 }
  0x60   :  { %v307_v31 = vmul.f32 %v592_v33, %v178_v32  ;;  %v180_v23 = vsub.f32 %v176_v8, %v750_v28  ;;  %288 = vadd.xlane.f32.xlu0 %v287_v42  ;;  %v377_v41 = vadd.f32 %v376_v9, %v375_v38  ;;  %v374_v27 = vmul.f32 %v694_v40, %v750_v28  ;;  %v293_v28 = vld [vmem:[#allocation7 + $0x1] sm:$0x1] }
  0x61   :  { %v308_v11 = vmul.f32 %v595_v34, %v179_v30  ;;  %v310_v39 = vsel %vm280_vm1, %v306_v37, 0.0  ;;  %v378_v33 = vsel %vm280_vm1, %v373_v36, 0.0  ;;  %v363_v18 = vadd.f32 %v714_v51, %v361_v7 }
  0x62   :  { %v311_v50 = vsel %vm280_vm1, %v307_v31, 0.0  ;;  %v309_v43 = vmul.f32 %v598_v35, %v180_v23  ;;  %v379_v48 = vadd.f32 %v378_v33, %v377_v41  ;;  %v380_v47 = vsel %vm280_vm1, %v374_v27, 0.0  ;;  %v321_v35 = vld [vmem:[#allocation7 + $0x3] sm:$0x1] }
  0x63   :  { %v312_v44 = vadd.f32 %v311_v50, %v310_v39  ;;  %v313_v45 = vsel %vm280_vm1, %v308_v11, 0.0  ;;  %v365_v46 = vadd.f32 %v364_v14, %v363_v18  ;;  %vm291_vm0 = vcmask 0  }
  0x64   :  { %v315_v10 = vsel %vm280_vm1, %v309_v43, 0.0  ;;  %v381_v40 = vadd.f32 %v380_v47, %v379_v48 }
  0x65   :  { %v314_v34 = vadd.f32 %v313_v45, %v312_v44  ;;  %366 = vadd.xlane.f32.xlu0 %v365_v46 }
  0x67   :  { %v316_v12 = vadd.f32 %v315_v10, %v314_v34 }
  0x69   :  { %317 = vadd.xlane.f32.xlu1 %v316_v12 }
  0x6d   :  { %382 = vadd.xlane.f32.xlu1 %v381_v40 }
  0xc3   :  { %v302_v51 = vpop.xlane.xlu0 %301 }
  0xc4   :  { %v303_v55 = vadd.f32 %v302_v51, %v293_v28 }
  0xc6   :  { %304 = vst.msk [vmem:[#allocation7 + $0x1] sm:$0x1] %vm291_vm0, %v303_v55 }
  0xe7   :  { %v334_v56 = vpop.xlane.xlu1 %333 }
  0xe8   :  { %v335_v58 = vadd.f32 %v334_v56, %v321_v35 }
  0xea   :  { %336 = vst.msk [vmem:[#allocation7 + $0x3] sm:$0x1] %vm291_vm0, %v335_v58 }
  0xed   :  { %v289_v63 = vpop.xlane.xlu0 %288 }
  0xee   :  { %v290_v49 = vadd.f32 %v289_v63, %v254_v60 }
  0xf0   :  { %292 = vst.msk [vmem:[#allocation7] sm:$0x1] %vm291_vm0, %v290_v49 }
  0xf2   :  { %v367_v3 = vpop.xlane.xlu0 %366 }
  0xf3   :  { %v368_v2 = vadd.f32 %v367_v3, %v337_v0 }
  0xf5   :  { %369 = vst.msk [vmem:[#allocation7 + $0x4] sm:$0x1] %vm291_vm0, %v368_v2 }
  0xf6   :  { %v318_v19 = vpop.xlane.xlu1 %317 }
  0xf7   :  { %v319_v59 = vadd.f32 %v318_v19, %v305_v54 }
  0xf9   :  { %320 = vst.msk [vmem:[#allocation7 + $0x2] sm:$0x1] %vm291_vm0, %v319_v59 }
  0xfa   :  { %v383_v61 = vpop.xlane.xlu1 %382 }
  0xfb   :  { %v384_v16 = vadd.f32 %v383_v61, %v370_v53 }
  0xfd   :  { %385 = vst.msk [vmem:[#allocation7 + $0x5] sm:$0x1] %vm291_vm0, %v384_v16 }
  0xfe   :  { %483 = shalt.err (!%p480_p6)
}
  0xff   :  { %s484_s13 = scalar_lea.hbm %s830_s3, 128 }
 0x100   :  { %p485_p7 = scmp.ne.s32.totalorder %s830_s3, %s484_s13  ;;  %p488_p8 = scmp.lt.u32.totalorder %s484_s13, %s830_s3 }
 0x102   :  { %p490_p9 = pnand %p488_p8, %p485_p7 }
 0x104   :  { %493 = shalt.err (!%p490_p9)
}
 0x105   :  { %395 = dma.vmem_to_hbm [thread:$0]  %s393_s2, 128, %s830_s3, [#allocation4]  }
 0x106   :  { %498 = dma.done.wait [#allocation4], 128  }
 0x107   :  { %499 = vsyncadd [#allocation4], 4294967168 }
 0x108   :  { %399 = vsyncpa [#allocation3], 1 }
 0x109   :  { %400 = vsyncpa [#allocation6], 1 }
 0x10a   :  { %401 = vsyncpa [#allocation4], 1 }

</bundles_post_ra>
